<compile_context>
chip_gen: v5e
topology: v5e:2x2
jax: 0.10.0
libtpu: 0.0.40
codegen_flags: <defaults>
</compile_context>

<pallas_src>
import jax
import jax.numpy as jnp
from jax.experimental import pallas as pl
from jax.experimental.pallas import tpu as pltpu


# ---------------------------------------------------------------------------
# helpers
# ---------------------------------------------------------------------------
def _round_up(v, m):
    return (v + m - 1) // m * m


def _pick_tile(dim, candidates):
    """Pick the tile (from descending `candidates`) minimizing padded size.

    Ties go to the largest tile (fewer grid steps, fewer HBM re-reads)."""
    best_t = candidates[0]
    best_p = _round_up(dim, best_t)
    for t in candidates[1:]:
        p = _round_up(dim, t)
        if p < best_p:
            best_t, best_p = t, p
    return best_t, best_p


# Tile candidates (all multiples of 16 sublanes / 128 lanes).
_TM_CANDIDATES = (512, 256, 128, 64, 32, 16)
_TN_CANDIDATES = (512, 256, 128)
_TK_CANDIDATES = (1024, 512, 256, 128)


def _vmem_limit_bytes():
    """Per-generation scoped-VMEM limit: ~3/4 of physical, capped at 100 MiB.

    v7x (64 MiB physical) -> ~48 MiB; v5e/v6e (128 MiB) -> ~96 MiB (well above
    v5e's tiny 16 MiB default scoped limit)."""
    try:
        cap = pltpu.get_tpu_info().vmem_capacity_bytes
    except Exception:
        cap = 64 << 20          # conservative fallback (v7x-sized)
    return int(min(cap * 3 // 4, 100 << 20))


# ---------------------------------------------------------------------------
# kernels
# ---------------------------------------------------------------------------
def _mylinear_kernel_f32out(x_ref, w_ref, b_ref, o_ref):
    """f32 output: accumulate directly into the (VMEM-resident) output block."""
    k = pl.program_id(2)

    @pl.when(k == 0)
    def _init():
        o_ref[...] = jnp.zeros_like(o_ref)

    o_ref[...] += jnp.dot(x_ref[...], w_ref[...],
                          preferred_element_type=jnp.float32)

    @pl.when(k == pl.num_programs(2) - 1)
    def _finalize():
        # Fused epilogue on the VPU: bias add + relu (bias stays f32).
        o_ref[...] = jnp.maximum(o_ref[...] + b_ref[...], 0.0)


def _mylinear_kernel_acc(x_ref, w_ref, b_ref, o_ref, acc_ref):
    """Narrow output dtypes: f32 scratch accumulator + cast in the epilogue."""
    k = pl.program_id(2)

    @pl.when(k == 0)
    def _init():
        acc_ref[...] = jnp.zeros_like(acc_ref)

    acc_ref[...] += jnp.dot(x_ref[...], w_ref[...],
                            preferred_element_type=jnp.float32)

    @pl.when(k == pl.num_programs(2) - 1)
    def _finalize():
        o_ref[...] = jnp.maximum(acc_ref[...] + b_ref[...], 0.0).astype(o_ref.dtype)


def _pallas_linear(x_p, w_p, b_p, Mp, Np, Kp, tm, tn, tk, out_dtype):
    grid = (Mp // tm, Np // tn, Kp // tk)

    if jnp.dtype(out_dtype) == jnp.float32:
        kernel = _mylinear_kernel_f32out
        scratch = []
    else:
        kernel = _mylinear_kernel_acc
        scratch = [pltpu.VMEM((tm, tn), jnp.float32)]

    return pl.pallas_call(
        kernel,
        out_shape=jax.ShapeDtypeStruct((Mp, Np), out_dtype),
        grid_spec=pltpu.PrefetchScalarGridSpec(
            num_scalar_prefetch=0,
            grid=grid,
            in_specs=[
                pl.BlockSpec((tm, tk), lambda i, j, k: (i, k)),   # x tile
                pl.BlockSpec((tk, tn), lambda i, j, k: (k, j)),   # w tile
                pl.BlockSpec((1, tn), lambda i, j, k: (0, j)),    # bias, resident over k
            ],
            out_specs=pl.BlockSpec((tm, tn), lambda i, j, k: (i, j)),
            scratch_shapes=scratch,
        ),
        compiler_params=pltpu.CompilerParams(
            dimension_semantics=("parallel", "parallel", "arbitrary"),
            vmem_limit_bytes=_vmem_limit_bytes(),
        ),
    )(x_p, w_p, b_p)


# ---------------------------------------------------------------------------
# module wrapper
# ---------------------------------------------------------------------------
class MyLinearPallas:
    """Pallas TPU equivalent of MyLinear: relu(X @ weight + bias).

    Weight/bias padding + MXU-dtype cast happen ONCE at construction (they are
    parameters); only the activation is padded/cast per call.
    """

    def __init__(self, weight, bias, *, mxu_dtype=None, out_dtype=None):
        K, N = weight.shape
        assert bias.shape == (N,)
        self.K, self.N = K, N
        self.out_dtype = jnp.dtype(out_dtype if out_dtype is not None else weight.dtype)

        # bf16 MXU operands by default (f32 accumulation inside the kernel).
        if mxu_dtype is None:
            mxu_dtype = jnp.bfloat16 if jnp.dtype(weight.dtype) == jnp.float32 else weight.dtype
        self.mxu_dtype = jnp.dtype(mxu_dtype)

        # Lane-dim padding (128) + adaptive tile pick (minimizes padded work).
        self.tn, self.Np = _pick_tile(_round_up(N, 128), _TN_CANDIDATES)
        self.tk, self.Kp = _pick_tile(_round_up(K, 128), _TK_CANDIDATES)

        w = weight.astype(self.mxu_dtype)
        self.w_p = jnp.pad(w, ((0, self.Kp - K), (0, self.Np - N)))
        self.b_p = jnp.pad(bias.astype(jnp.float32), (0, self.Np - N)).reshape(1, self.Np)

    def __call__(self, x):
        M, K = x.shape
        assert K == self.K, f"in_units mismatch: {K} vs {self.K}"

        # M padded to a multiple of 16 (bf16 packs 2 rows per sublane).
        tm, Mp = _pick_tile(_round_up(M, 16), _TM_CANDIDATES)

        # v7x megacore: make sure at least one "parallel" grid axis has >= 2
        # blocks so the second TensorCore is not idle for small batches.
        tn = self.tn
        while (Mp // tm == 1 and self.Np // tn == 1
               and tn > 128 and self.Np % (tn // 2) == 0):
            tn //= 2

        # Cast BEFORE padding so the padded activation is written at 2 bytes.
        x_p = jnp.pad(x.astype(self.mxu_dtype), ((0, Mp - M), (0, self.Kp - K)))

        out_p = _pallas_linear(x_p, self.w_p, self.b_p, Mp, self.Np, self.Kp,
                               tm, tn, self.tk, self.out_dtype)
        return out_p[:M, :self.N]


def my_linear(x, weight, bias, **kwargs):
    """One-shot functional wrapper (prefer MyLinearPallas for repeated calls)."""
    return MyLinearPallas(weight, bias, **kwargs)(x)


# ---------------------------------------------------------------------------
# demo / self-test
# ---------------------------------------------------------------------------
if __name__ == "__main__":
    key = jax.random.PRNGKey(0)
    k_x, k_w, k_b = jax.random.split(key, 3)

    # Shapes implied by the module defaults: in_units=20, out_units=5.
    in_units, out_units, batch = 20, 5, 8
    weight = jax.random.normal(k_w, (in_units, out_units), dtype=jnp.float32)
    bias = jax.random.normal(k_b, (out_units,), dtype=jnp.float32)
    x = jax.random.normal(k_x, (batch, in_units), dtype=jnp.float32)

    # Default fast path: bf16 MXU operands, f32 accumulation, f32 output.
    layer = MyLinearPallas(weight, bias)
    out = layer(x)
    jax.block_until_ready(out)
    assert out.shape == (batch, out_units)
    ref_bf16 = jnp.maximum(
        jnp.dot(x.astype(jnp.bfloat16), weight.astype(jnp.bfloat16),
                preferred_element_type=jnp.float32) + bias, 0.0)
    assert jnp.allclose(out, ref_bf16, atol=1e-2, rtol=1e-2)

    # Exact f32-operand path still available and matches the f32 reference.
    layer_f32 = MyLinearPallas(weight, bias, mxu_dtype=jnp.float32)
    out_f32 = layer_f32(x)
    jax.block_until_ready(out_f32)
    ref_f32 = jnp.maximum(x @ weight + bias, 0.0)
    assert jnp.allclose(out_f32, ref_f32, atol=1e-5, rtol=1e-5)

    # Larger, awkward shapes exercise the tiled M/N/K grid + adaptive tiles
    # (N=768 picks tn=256 instead of padding to 1024).
    M2, K2, N2 = 384, 1024, 768
    kx2, kw2, kb2 = jax.random.split(jax.random.PRNGKey(1), 3)
    x2 = jax.random.normal(kx2, (M2, K2), dtype=jnp.float32)
    w2 = jax.random.normal(kw2, (K2, N2), dtype=jnp.float32)
    b2 = jax.random.normal(kb2, (N2,), dtype=jnp.float32)
    layer2 = MyLinearPallas(w2, b2)
    out2 = layer2(x2)
    jax.block_until_ready(out2)
    ref2 = jnp.maximum(
        jnp.dot(x2.astype(jnp.bfloat16), w2.astype(jnp.bfloat16),
                preferred_element_type=jnp.float32) + b2, 0.0)
    assert out2.shape == (M2, N2)
    assert jnp.allclose(out2, ref2, atol=5e-2, rtol=5e-2)

    print("KERNEL_OK")
</pallas_src>

<mosaic_0001>
module attributes {stable_mosaic.version = 11 : i64} {
  func.func @_mylinear_kernel_f32out(%arg0: i32, %arg1: i32, %arg2: i32, %arg3: memref<16x128xbf16, #tpu.memory_space<vmem>>, %arg4: memref<128x128xbf16, #tpu.memory_space<vmem>>, %arg5: memref<1x128xf32, #tpu.memory_space<vmem>>, %arg6: memref<16x128xf32, #tpu.memory_space<vmem>>) attributes {dimension_semantics = [#tpu.dimension_semantics<parallel>, #tpu.dimension_semantics<parallel>, #tpu.dimension_semantics<arbitrary>], iteration_bounds = array<i64: 1, 1, 1>, scalar_prefetch = 0 : i64, scratch_operands = 0 : i64, tpu.core_type = #tpu.core_type<tc>, window_params = [{transform_indices = @transform_0, window_bounds = array<i64: 16, 128>}, {transform_indices = @transform_1, window_bounds = array<i64: 128, 128>}, {transform_indices = @transform_2, window_bounds = array<i64: 1, 128>}, {transform_indices = @transform_3, window_bounds = array<i64: 16, 128>}]} {
    %c0_i32 = arith.constant 0 : i32
    %0 = arith.cmpi eq, %arg2, %c0_i32 : i32
    %1 = arith.extui %0 : i1 to i32
    %c0_i32_0 = arith.constant 0 : i32
    %2 = arith.cmpi ne, %1, %c0_i32_0 : i32
    scf.if %2 {
      %cst_10 = arith.constant 0.000000e+00 : f32
      %12 = vector.broadcast %cst_10 : f32 to vector<16x128xf32>
      %c0_11 = arith.constant 0 : index
      %c0_12 = arith.constant 0 : index
      %13 = vector.load %arg6[%c0_11, %c0_12] : memref<16x128xf32, #tpu.memory_space<vmem>>, vector<16x128xf32>
      tpu.vector_store %arg6[%c0_11, %c0_12], %12 {strides = array<i32>} : memref<16x128xf32, #tpu.memory_space<vmem>>, vector<16x128xf32>,
    } else {
    }
    %c0 = arith.constant 0 : index
    %c0_1 = arith.constant 0 : index
    %3 = vector.load %arg6[%c0, %c0_1] : memref<16x128xf32, #tpu.memory_space<vmem>>, vector<16x128xf32>
    %c0_2 = arith.constant 0 : index
    %c0_3 = arith.constant 0 : index
    %4 = vector.load %arg3[%c0_2, %c0_3] : memref<16x128xbf16, #tpu.memory_space<vmem>>, vector<16x128xbf16>
    %c0_4 = arith.constant 0 : index
    %c0_5 = arith.constant 0 : index
    %5 = vector.load %arg4[%c0_4, %c0_5] : memref<128x128xbf16, #tpu.memory_space<vmem>>, vector<128x128xbf16>
    %cst = arith.constant dense<0.000000e+00> : vector<16x128xf32>
    %6 = tpu.matmul %4, %5, %cst {dimension_numbers = #tpu.dot_dimension_numbers<[1], [0], [0], [1], [0, 0, 1, 1], [], []>} : vector<16x128xbf16>, vector<128x128xbf16>, vector<16x128xf32> -> vector<16x128xf32>
    %7 = arith.addf %3, %6 : vector<16x128xf32>
    %c0_6 = arith.constant 0 : index
    %c0_7 = arith.constant 0 : index
    %8 = vector.load %arg6[%c0_6, %c0_7] : memref<16x128xf32, #tpu.memory_space<vmem>>, vector<16x128xf32>
    tpu.vector_store %arg6[%c0_6, %c0_7], %7 {strides = array<i32>} : memref<16x128xf32, #tpu.memory_space<vmem>>, vector<16x128xf32>,
    %c0_i32_8 = arith.constant 0 : i32
    %9 = arith.cmpi eq, %arg2, %c0_i32_8 : i32
    %10 = arith.extui %9 : i1 to i32
    %c0_i32_9 = arith.constant 0 : i32
    %11 = arith.cmpi ne, %10, %c0_i32_9 : i32
    scf.if %11 {
      %c0_10 = arith.constant 0 : index
      %c0_11 = arith.constant 0 : index
      %12 = vector.load %arg6[%c0_10, %c0_11] : memref<16x128xf32, #tpu.memory_space<vmem>>, vector<16x128xf32>
      %c0_12 = arith.constant 0 : index
      %c0_13 = arith.constant 0 : index
      %13 = vector.load %arg5[%c0_12, %c0_13] : memref<1x128xf32, #tpu.memory_space<vmem>>, vector<1x128xf32>
      %14 = vector.broadcast %13 : vector<1x128xf32> to vector<16x128xf32>
      %15 = arith.addf %12, %14 : vector<16x128xf32>
      %cst_14 = arith.constant 0.000000e+00 : f32
      %16 = vector.broadcast %cst_14 : f32 to vector<16x128xf32>
      %17 = arith.maximumf %15, %16 : vector<16x128xf32>
      %c0_15 = arith.constant 0 : index
      %c0_16 = arith.constant 0 : index
      %18 = vector.load %arg6[%c0_15, %c0_16] : memref<16x128xf32, #tpu.memory_space<vmem>>, vector<16x128xf32>
      tpu.vector_store %arg6[%c0_15, %c0_16], %17 {strides = array<i32>} : memref<16x128xf32, #tpu.memory_space<vmem>>, vector<16x128xf32>,
    } else {
    }
    return
  }
  func.func @transform_0(%arg0: i32, %arg1: i32, %arg2: i32) -> (i32, i32) {
    %c0_i32 = arith.constant 0 : i32
    return %arg0, %arg2 : i32, i32
  }
  func.func @transform_1(%arg0: i32, %arg1: i32, %arg2: i32) -> (i32, i32) {
    %c0_i32 = arith.constant 0 : i32
    return %arg2, %arg1 : i32, i32
  }
  func.func @transform_2(%arg0: i32, %arg1: i32, %arg2: i32) -> (i32, i32) {
    %c0_i32 = arith.constant 0 : i32
    %c0_i32_0 = arith.constant 0 : i32
    return %c0_i32, %arg1 : i32, i32
  }
  func.func @transform_3(%arg0: i32, %arg1: i32, %arg2: i32) -> (i32, i32) {
    %c0_i32 = arith.constant 0 : i32
    return %arg0, %arg1 : i32, i32
  }
}

</mosaic_0001>

<bundles_post_ra>
// kernel: tpu_custom_call.1
= control target key start
LH: loop header
LB: loop body
LE: loop exit
PB: predicated region body
PF: predicated region fallthrough
CT: control target
= control target key end

     0   :  { %8 = vsyncpa [#allocation3], 0  ;;  %s351_s0 = inlined_call_operand.hbm [shape: bf16[16,128], index: 0, kind: input, shape index: {}]   ;;  %s352_s1 = inlined_call_operand.hbm [shape: bf16[128,128], index: 1, kind: input, shape index: {}]   ;;  %s353_s2 = inlined_call_operand.vmem [shape: f32[1,128], index: 2, kind: input, shape index: {}]   ;;  %s354_s3 = inlined_call_operand.hbm [shape: f32[16,128], index: 3, kind: output, shape index: {}]  }
   0x1   :  { %9 = vsyncpa [#allocation6], 0 }
   0x2   :  { %10 = vsyncpa [#allocation4], 0  ;;  %s15_s14 = sshll.u32 %s351_s0, 4  ;;  %s312_s15 = smov [#allocation2]   ;;  %s16_s14 = int_to_ptr.hbm [resolvable:$true] %s15_s14 }
   0x3   :  { %s17_s16 = sshll.u32 %s312_s15, 4  ;;  %s28_s19 = sshll.u32 %s352_s1, 4  ;;  %s18_s16 = int_to_ptr.vmem [resolvable:$true] %s17_s16  ;;  %s29_s19 = int_to_ptr.hbm [resolvable:$true] %s28_s19 }
   0x4   :  { %s313_s20 = smov 64   ;;  %s314_s21 = smov 4  }
   0x5   :  { %23 = dma.hbm_to_vmem [thread:$0]  %s16_s14, 128, %s18_s16, [#allocation3], %s313_s20, %s313_s20, %s314_s21  }
   0x6   :  { %s315_s22 = smov [#allocation5]  }
   0x7   :  { %s30_s23 = sshll.u32 %s315_s22, 4  ;;  %s31_s23 = int_to_ptr.vmem [resolvable:$true] %s30_s23 }
   0x8   :  { %36 = dma.hbm_to_vmem [thread:$0]  %s29_s19, 1024, %s31_s23, [#allocation6], %s313_s20, %s313_s20, %s314_s21  }
   0x9   :  { %306 = dma.done.wait [#allocation3], 128  }
   0xa   :  { %307 = vsyncadd [#allocation3], 4294967168 }
   0xb   :  { %308 = dma.done.wait [#allocation6], 1024  }
   0xc   :  { %309 = vsyncadd [#allocation6], 4294966272  ;;  %v224_v0 = vld [vmem:[#allocation5 + $0x38] sm:$0xff]  ;;  %v223_v1 = vld [vmem:[#allocation5 + $0x30] sm:$0xff]  ;;  %s316_s24 = smov [#allocation7]   ;;  %s166_s28 = sshll.u32 %s354_s3, 4  ;;  %s167_s28 = int_to_ptr.hbm [resolvable:$true] %s166_s28 }
   0xd   :  { %127 = vmatpush.bf16.msra.mxu0 %v224_v0  ;;  %v222_v2 = vld [vmem:[#allocation5 + $0x28] sm:$0xff]  ;;  %v221_v3 = vld [vmem:[#allocation5 + $0x20] sm:$0xff]  ;;  %v220_v4 = vld [vmem:[#allocation5 + $0x18] sm:$0xff]  ;;  %s164_s25 = sshll.u32 %s316_s24, 4  ;;  %s317_s29 = smov 128   ;;  %s165_s25 = int_to_ptr.vmem [resolvable:$true] %s164_s25 }
   0xe   :  { %v219_v5 = vld [vmem:[#allocation5 + $0x10] sm:$0xff]  ;;  %v218_v6 = vld [vmem:[#allocation5 + $0x8] sm:$0xff]  ;;  %v217_v7 = vld [vmem:[#allocation5] sm:$0xff]  ;;  %s318_s30 = smov 8  }
   0xf   :  { %v216_v8 = vld [vmem:[#allocation2] sm:$0xff] }
  0x10   :  { %v233_v9 = vld [vmem:[%s353_s2] ss:$0 sm:$0xff] }
  0x11   :  { %128 = vmatpush.bf16.msra.mxu0 %v223_v1 }
  0x15   :  { %129 = vmatpush.bf16.msra.mxu0 %v222_v2 }
  0x19   :  { %130 = vmatpush.bf16.msra.mxu0 %v221_v3 }
  0x1d   :  { %131 = vmatpush.bf16.msra.mxu0 %v220_v4 }
  0x21   :  { %132 = vmatpush.bf16.msra.mxu0 %v219_v5 }
  0x25   :  { %133 = vmatpush.bf16.msra.mxu0 %v218_v6 }
  0x29   :  { %134 = vmatpush.bf16.msra.mxu0 %v217_v7 }
  0x2c   :  { %135 = vmatmul.bf16.vlgmr.msra.gmra.mxu0 %v216_v8 }
  0xa9   :  { %v136_v10 = vpop.f32.mrf.mxu0 }
  0xaa   :  { %v154_v11 = vadd.f32 %v233_v9, %v136_v10 }
  0xac   :  { %v156_v12 = vmax.f32 %v154_v11, 0.0 }
  0xae   :  { %158 = vst [vmem:[#allocation7] sm:$0xff] %v156_v12 }
  0xb1   :  { %v138_v13 = vpop.f32.mrf.mxu0 }
  0xb2   :  { %v155_v14 = vadd.f32 %v233_v9, %v138_v13 }
  0xb4   :  { %v157_v15 = vmax.f32 %v155_v14, 0.0 }
  0xb6   :  { %159 = vst [vmem:[#allocation7 + $0x8] sm:$0xff] %v157_v15 }
  0xb7   :  { %172 = dma.vmem_to_hbm [thread:$0]  %s165_s25, 256, %s167_s28, [#allocation4], %s317_s29, %s317_s29, %s318_s30  }
  0xb8   :  { %310 = dma.done.wait [#allocation4], 256  }
  0xb9   :  { %311 = vsyncadd [#allocation4], 4294967040 }
  0xba   :  { %177 = vsyncpa [#allocation3], 1 }
  0xbb   :  { %178 = vsyncpa [#allocation6], 1 }
  0xbc   :  { %179 = vsyncpa [#allocation4], 1 }

</bundles_post_ra>
